<compile_context>
chip_gen: v7x
topology: tpu7x:2x2x1
jax: 0.10.0
libtpu: 0.0.40
codegen_flags: <defaults>
</compile_context>

<pallas_src>
import functools

import jax
import jax.numpy as jnp
from jax.experimental import pallas as pl
from jax.experimental.pallas import tpu as pltpu


_NUM_CORES = 2                    # v7x megacore split; sequential on v5e/v6e
_BLOCK_BYTES_BUDGET = 2 * 1024 * 1024   # per-input-block f32 bytes (keeps 2in x 2buf ~8 MiB)


def _ceil_div(a, b):
    return -(-a // b)


def _round_up(a, b):
    return _ceil_div(a, b) * b


def _plan_layout(total):
    """Pick (lanes, tm, nblk, padded_rows) minimizing zero padding, lanes-dense."""
    best = None
    for lanes in (512, 256, 128):
        rows = _ceil_div(total, lanes)
        rows_per_core = _ceil_div(rows, _NUM_CORES)
        tm_max = max(8, (_BLOCK_BYTES_BUDGET // (lanes * 4)) // 8 * 8)
        nblk = max(1, _ceil_div(rows_per_core, tm_max))
        tm = _round_up(_ceil_div(rows_per_core, nblk), 8)
        padded_rows = _NUM_CORES * nblk * tm
        cand = (padded_rows * lanes, -lanes, lanes, tm, nblk, padded_rows)
        if best is None or cand < best:
            best = cand
    _, _, lanes, tm, nblk, padded_rows = best
    return lanes, tm, nblk, padded_rows


def _content_loss_kernel(x_ref, t_ref, part_ref, acc_ref, *, weight, tm, lanes):
    """Accumulate sum((x*w - t)^2) per core into an (8, lanes) vector accumulator."""
    i = pl.program_id(1)

    @pl.when(i == 0)
    def _():
        acc_ref[...] = jnp.zeros_like(acc_ref)

    x = x_ref[...].astype(jnp.float32)
    t = t_ref[...].astype(jnp.float32)
    d = x * jnp.float32(weight) - t
    d2 = d * d
    # VPU-only partial accumulation into a vreg-shaped buffer; the cross-lane
    # reduce is deferred to the wrapper (done once on the tiny partials).
    acc_ref[...] += jnp.sum(d2.reshape(tm // 8, 8, lanes), axis=0)

    @pl.when(i == pl.num_programs(1) - 1)
    def _():
        part_ref[0] = acc_ref[...]


def _mse_loss_pallas(x2d, t2d, *, weight, tm, nblk, lanes, true_count):
    """x2d, t2d: (padded_rows, lanes) slabs. Returns scalar f32 mean-squared error."""
    kernel = functools.partial(_content_loss_kernel, weight=weight, tm=tm, lanes=lanes)

    partials = pl.pallas_call(
        kernel,
        out_shape=jax.ShapeDtypeStruct((_NUM_CORES, 8, lanes), jnp.float32),
        grid_spec=pltpu.PrefetchScalarGridSpec(
            num_scalar_prefetch=0,
            grid=(_NUM_CORES, nblk),
            in_specs=[
                pl.BlockSpec((tm, lanes), lambda c, i: (c * nblk + i, 0)),
                pl.BlockSpec((tm, lanes), lambda c, i: (c * nblk + i, 0)),
            ],
            out_specs=pl.BlockSpec((1, 8, lanes), lambda c, i: (c, 0, 0)),
            scratch_shapes=[pltpu.VMEM((8, lanes), jnp.float32)],
        ),
        compiler_params=pltpu.CompilerParams(
            dimension_semantics=("parallel", "arbitrary")),
    )(x2d, t2d)

    # Final cross-lane reduce + mean scale (tiny: NUM_CORES x 8 x lanes elems).
    return jnp.sum(partials) * jnp.float32(1.0 / true_count)


class ContentLoss:
    """JAX/Pallas port of torch Content_loss (forward semantics)."""

    def __init__(self, weight, target):
        self.weight = float(weight)
        # target.detach() * weight  (detach == stop_gradient here)
        self.target = jax.lax.stop_gradient(target) * self.weight
        self.loss = None
        self.output = None

        # Precompute the lane-dense layout and the padded target slab once.
        self._total = 1
        for d in self.target.shape:
            self._total *= int(d)
        self._lanes, self._tm, self._nblk, self._padded_rows = _plan_layout(self._total)

        t_flat = self.target.reshape(-1)
        pad = self._padded_rows * self._lanes - self._total
        if pad:
            t_flat = jnp.pad(t_flat, (0, pad))
        self._t2d = t_flat.reshape(self._padded_rows, self._lanes)

    def __call__(self, x):
        assert x.shape == self.target.shape, "input/target shape mismatch"

        x_flat = x.reshape(-1)
        pad = self._padded_rows * self._lanes - self._total
        if pad:
            x_flat = jnp.pad(x_flat, (0, pad))   # zeros contribute 0 to the sum
        x2d = x_flat.reshape(self._padded_rows, self._lanes)

        self.loss = _mse_loss_pallas(
            x2d, self._t2d,
            weight=self.weight, tm=self._tm, nblk=self._nblk,
            lanes=self._lanes, true_count=self._total)

        # forward returns the unmodified input (pure passthrough).
        self.output = x
        return self.output

    # TODO(synk): PyTorch `backward()` (autograd on self.loss) has no direct
    # Pallas forward-kernel equivalent; use jax.grad on a functional wrapper.


if __name__ == "__main__":
    key = jax.random.PRNGKey(0)
    k1, k2 = jax.random.split(key)

    N, C, H, W = 2, 4, 16, 16
    target = jax.random.normal(k1, (N, C, H, W), dtype=jnp.float32)
    x = jax.random.normal(k2, (N, C, H, W), dtype=jnp.float32)
    weight = 0.75

    module = ContentLoss(weight, target)
    out = module(x)
    out = jax.block_until_ready(out)
    loss = jax.block_until_ready(module.loss)

    # reference check (plain JAX)
    ref_loss = jnp.mean((x * weight - jax.lax.stop_gradient(target) * weight) ** 2)
    assert out.shape == x.shape
    assert jnp.allclose(out, x)
    assert jnp.allclose(loss, ref_loss, rtol=1e-5, atol=1e-6), (loss, ref_loss)

    print("KERNEL_OK")
</pallas_src>

<mosaic_0001>
module attributes {stable_mosaic.version = 11 : i64} {
  func.func @_content_loss_kernel(%arg0: i32, %arg1: i32, %arg2: memref<8x128xf32, #tpu.memory_space<vmem>>, %arg3: memref<8x128xf32, #tpu.memory_space<vmem>>, %arg4: memref<1x8x128xf32, #tpu.memory_space<vmem>>, %arg5: memref<8x128xf32, #tpu.memory_space<vmem>>) attributes {dimension_semantics = [#tpu.dimension_semantics<parallel>, #tpu.dimension_semantics<arbitrary>], iteration_bounds = array<i64: 2, 1>, scalar_prefetch = 0 : i64, scratch_operands = 1 : i64, tpu.core_type = #tpu.core_type<tc>, window_params = [{transform_indices = @transform_0, window_bounds = array<i64: 8, 128>}, {transform_indices = @transform_1, window_bounds = array<i64: 8, 128>}, {transform_indices = @transform_2, window_bounds = array<i64: 1, 8, 128>}]} {
    %c0_i32 = arith.constant 0 : i32
    %0 = arith.cmpi eq, %arg1, %c0_i32 : i32
    %1 = arith.extui %0 : i1 to i32
    %c0_i32_0 = arith.constant 0 : i32
    %2 = arith.cmpi ne, %1, %c0_i32_0 : i32
    scf.if %2 {
      %cst_11 = arith.constant 0.000000e+00 : f32
      %17 = vector.broadcast %cst_11 : f32 to vector<8x128xf32>
      %c0_12 = arith.constant 0 : index
      %c0_13 = arith.constant 0 : index
      %18 = vector.load %arg5[%c0_12, %c0_13] : memref<8x128xf32, #tpu.memory_space<vmem>>, vector<8x128xf32>
      tpu.vector_store %arg5[%c0_12, %c0_13], %17 {strides = array<i32>} : memref<8x128xf32, #tpu.memory_space<vmem>>, vector<8x128xf32>,
    } else {
    }
    %c0 = arith.constant 0 : index
    %c0_1 = arith.constant 0 : index
    %3 = vector.load %arg2[%c0, %c0_1] : memref<8x128xf32, #tpu.memory_space<vmem>>, vector<8x128xf32>
    %c0_2 = arith.constant 0 : index
    %c0_3 = arith.constant 0 : index
    %4 = vector.load %arg3[%c0_2, %c0_3] : memref<8x128xf32, #tpu.memory_space<vmem>>, vector<8x128xf32>
    %cst = arith.constant 7.500000e-01 : f32
    %5 = vector.broadcast %cst : f32 to vector<8x128xf32>
    %6 = arith.mulf %3, %5 : vector<8x128xf32>
    %7 = arith.subf %6, %4 : vector<8x128xf32>
    %8 = arith.mulf %7, %7 : vector<8x128xf32>
    %c0_4 = arith.constant 0 : index
    %c0_5 = arith.constant 0 : index
    %9 = vector.load %arg5[%c0_4, %c0_5] : memref<8x128xf32, #tpu.memory_space<vmem>>, vector<8x128xf32>
    %10 = vector.shape_cast %8 : vector<8x128xf32> to vector<1x8x128xf32>
    %cst_6 = arith.constant dense<0.000000e+00> : vector<8x128xf32>
    %11 = vector.multi_reduction <add>, %10, %cst_6 [0] : vector<1x8x128xf32> to vector<8x128xf32>
    %12 = arith.addf %9, %11 : vector<8x128xf32>
    %c0_7 = arith.constant 0 : index
    %c0_8 = arith.constant 0 : index
    %13 = vector.load %arg5[%c0_7, %c0_8] : memref<8x128xf32, #tpu.memory_space<vmem>>, vector<8x128xf32>
    tpu.vector_store %arg5[%c0_7, %c0_8], %12 {strides = array<i32>} : memref<8x128xf32, #tpu.memory_space<vmem>>, vector<8x128xf32>,
    %c0_i32_9 = arith.constant 0 : i32
    %14 = arith.cmpi eq, %arg1, %c0_i32_9 : i32
    %15 = arith.extui %14 : i1 to i32
    %c0_i32_10 = arith.constant 0 : i32
    %16 = arith.cmpi ne, %15, %c0_i32_10 : i32
    scf.if %16 {
      %c0_11 = arith.constant 0 : index
      %c0_12 = arith.constant 0 : index
      %17 = vector.load %arg5[%c0_11, %c0_12] : memref<8x128xf32, #tpu.memory_space<vmem>>, vector<8x128xf32>
      %c0_13 = arith.constant 0 : index
      %c0_14 = arith.constant 0 : index
      %c0_15 = arith.constant 0 : index
      %18 = vector.load %arg4[%c0_13, %c0_14, %c0_15] : memref<1x8x128xf32, #tpu.memory_space<vmem>>, vector<1x8x128xf32>
      %19 = vector.shape_cast %18 : vector<1x8x128xf32> to vector<8x128xf32>
      %20 = vector.shape_cast %17 : vector<8x128xf32> to vector<1x8x128xf32>
      tpu.vector_store %arg4[%c0_13, %c0_14, %c0_15], %20 {strides = array<i32>} : memref<1x8x128xf32, #tpu.memory_space<vmem>>, vector<1x8x128xf32>,
    } else {
    }
    return
  }
  func.func @transform_0(%arg0: i32, %arg1: i32) -> (i32, i32) {
    %c1_i32 = arith.constant 1 : i32
    %0 = arith.muli %arg0, %c1_i32 : i32
    %1 = arith.addi %0, %arg1 : i32
    %c0_i32 = arith.constant 0 : i32
    %c0_i32_0 = arith.constant 0 : i32
    return %1, %c0_i32 : i32, i32
  }
  func.func @transform_1(%arg0: i32, %arg1: i32) -> (i32, i32) {
    %c1_i32 = arith.constant 1 : i32
    %0 = arith.muli %arg0, %c1_i32 : i32
    %1 = arith.addi %0, %arg1 : i32
    %c0_i32 = arith.constant 0 : i32
    %c0_i32_0 = arith.constant 0 : i32
    return %1, %c0_i32 : i32, i32
  }
  func.func @transform_2(%arg0: i32, %arg1: i32) -> (i32, i32, i32) {
    %c0_i32 = arith.constant 0 : i32
    %c0_i32_0 = arith.constant 0 : i32
    %c0_i32_1 = arith.constant 0 : i32
    return %arg0, %c0_i32, %c0_i32_0 : i32, i32, i32
  }
}

</mosaic_0001>

<bundles_post_ra>
// kernel: tpu_custom_call.1
= control target key start
LH: loop header
LB: loop body
LE: loop exit
PB: predicated region body
PF: predicated region fallthrough
CT: control target
= control target key end

     0   :  { %7 = vsyncpa [#allocation4], 0  ;;  %s821_s0 = inlined_call_operand.hbm [shape: f32[16,128], index: 0, kind: input, shape index: {}]   ;;  %s822_s1 = inlined_call_operand.hbm [shape: f32[16,128], index: 1, kind: input, shape index: {}]   ;;  %s823_s2 = inlined_call_operand.hbm [shape: f32[2,8,128], index: 2, kind: output, shape index: {}]  }
   0x1   :  { %9 = vsyncpa [#allocation4 + $0x1], 0 }
   0x2   :  { %10 = vsyncpa [#allocation7], 0 }
   0x3   :  { %12 = vsyncpa [#allocation7 + $0x1], 0 }
   0x4   :  { %13 = vsyncpa [#allocation5], 0 }
   0x5   :  { %15 = vsyncpa [#allocation5 + $0x1], 0  ;;  %s601_s9 = smov 0   ;;  %s603_s10 = smov 0  }
   0x6   :  { %s605_s11 = smov 0   ;;  %s607_s12 = smov 0  }
   0x7   :  { %s609_s13 = smov 0   ;;  %s611_s14 = smov 0  }
   0x8 LB: > { %s352_s15 = sadd.s32 4294967295, %s581_s14   ;;  %s353_s16 = sadd.s32 4294967294, %s581_s14   ;;  %s581_s14 = sphi %s611_s14, %s21_s14   ;;  %s577_s13 = sphi %s609_s13, %s843_s13   ;;  %s573_s12 = sphi %s607_s12, %s842_s12   ;;  %s569_s11 = sphi %s605_s11, %s841_s11   ;;  %s565_s10 = sphi %s603_s10, %s840_s10   ;;  %s561_s9 = sphi %s601_s9, %s839_s9  }
   0x9   : > { %s33_s17 = sadd.s32 1, %s577_s13  ;;  %s42_s18 = sadd.s32 1, %s569_s11 }
   0xa   : > { %p35_p0 = scmp.ge.s32.totalorder %s33_s17, 2  ;;  %p49_p1 = scmp.ne.s32.totalorder %s569_s11, %s565_s10 }
   0xb   : > { %p50_p2 = scmp.eq.s32.totalorder %s581_s14, 0  ;;  %p55_p3 = scmp.ne.s32.totalorder %s565_s10, %s561_s9 }
   0xc   : > { %s845_s17 = smov (%p35_p0, %s33_s17), 0  ;;  %p56_p5 = scmp.eq.s32.totalorder %s352_s15, 0 }
   0xd   : > { %p642_p4 = por %p50_p2, %p49_p1  ;;  %s39_s20 = ssub.s32 %s577_s13, %s845_s17 }
   0xe   : > { %p107_p6 = scmp.eq.s32.totalorder %s352_s15, 1  ;;  %p40_p7 = scmp.eq.s32.totalorder %s39_s20, 0 }
   0xf   : > { %p648_p8 = por %p56_p5, %p55_p3  ;;  %p113_p10 = scmp.eq.s32.totalorder %s353_s16, 1 }
  0x10   : > { %p652_p9 = por %p107_p6, %p49_p1  ;;  %p385_p13 = scmp.lt.s32.totalorder %s581_s14, 2 }
  0x11   : > { %s827_s21 = scalar_select %p648_p8, 1, 0 }
  0x12   : > { %s828_s22 = scalar_select %p652_p9, 1, 0 }
  0x13   : > { %s657_s23 = scalar_select %p40_p7, %s569_s11, %s42_s18  }
  0x14   : > { %p659_p11 = por %p113_p10, %p55_p3  ;;  %s666_s25 = sand.u32 1, %s569_s11  }
  0x15   : > { %s356_s26 = sshll.u32 %s666_s25, 3  ;;  %s357_s27 = sshll.u32 %s577_s13, 7 }
  0x16   : > { %s829_s24 = scalar_select %p659_p11, 1, 0 }
  0x17   : > { %s675_s30 = scalar_lea.hbm %s821_s0, %s357_s27  ;;  %s137_s3 = scalar_lea.vmem [#allocation3], %s356_s26 }
  0x18   : > { %s145_s4 = sshll.u32 %s137_s3, 4  ;;  %p683_p0 = pnand %p385_p13, %p642_p4  ;;  %s679_s4 = int_to_ptr.vmem [resolvable:$true] %s145_s4 }
  0x19   : > { %s134_s6 = scalar_lea.sflag [#allocation4], %s666_s25  ;;  %s435_s7 = scalar_lea.hbm %s675_s30, 128 }
  0x1a   : > { %p436_p3 = scmp.ne.s32.totalorder %s675_s30, %s435_s7  ;;  %p437_p5 = pneg %p683_p0 }
  0x1b   : > { %s440_s16 = scalar_lea.hbm %s821_s0, 256  ;;  %p441_p4 = scmp.lt.u32.totalorder %s675_s30, %s821_s0 }
  0x1c   : > { %p438_p6 = pnand %p437_p5, %p436_p3  ;;  %p442_p10 = scmp.lt.u32.totalorder %s440_s16, %s435_s7 }
  0x1d   : > { %p444_p12 = scmp.lt.u32.totalorder %s435_s7, %s675_s30 }
  0x1e   : > { %p439_p7 = pneg %p438_p6  ;;  %p443_p13 = por %p442_p10, %p441_p4 }
  0x20   : > { %p445_p1 = por %p444_p12, %p443_p13 }
  0x22   : > { %p446_p2 = pnand %p445_p1, %p439_p7 }
  0x24   : > { %449 = shalt.err (!%p446_p2)
}
  0x25   : > { %s450_s20 = scalar_lea.vmem %s679_s4, 128  ;;  %s583_s28 = smov [#allocation3]  }
  0x26   : > { %p451_p3 = scmp.ne.s32.totalorder %s679_s4, %s450_s20  ;;  %s455_s29 = sshll.u32 %s583_s28, 4  ;;  %s456_s29 = int_to_ptr.vmem [resolvable:$false] %s455_s29 }
  0x27   : > { %s457_s3 = scalar_lea.vmem %s456_s29, 256  ;;  %p458_p9 = scmp.lt.s32.totalorder %s679_s4, %s456_s29 }
  0x28   : > { %p453_p6 = pnand %p451_p3, %p437_p5  ;;  %p459_p4 = scmp.lt.s32.totalorder %s457_s3, %s450_s20 }
  0x2a   : > { %p454_p11 = pneg %p453_p6  ;;  %p460_p10 = por %p459_p4, %p458_p9 }
  0x2c   : > { %p461_p12 = pnand %p460_p10, %p454_p11 }
  0x2e   : > { %464 = shalt.err (!%p461_p12)
}
  0x2f   : > { %377 = dma.hbm_to_vmem [thread:$0]  (!%p683_p0), %s675_s30, 128, %s679_s4, %s134_s6  }
  0x30   : > { %p831_p1 = scmp.lt.s32.totalorder %s581_s14, 3  ;;  %p832_p2 = scmp.ge.s32.totalorder %s581_s14, 1 }
  0x31   : > { %s728_s16 = scalar_lea.hbm %s822_s1, %s357_s27  ;;  %s156_s18 = scalar_lea.vmem [#allocation6], %s356_s26 }
  0x32   : > { %p719_p7 = pnand %p832_p2, %p831_p1  ;;  %s164_s19 = sshll.u32 %s156_s18, 4  ;;  %s165_s19 = int_to_ptr.vmem [resolvable:$true] %s164_s19 }
  0x33   : > { %s153_s30 = scalar_lea.sflag [#allocation7], %s666_s25  ;;  %s465_s4 = scalar_lea.hbm %s728_s16, 128 }
  0x34   : > { %s833_s7 = scalar_select %p719_p7, 1, 0 }
  0x35   : > { %p466_p9 = scmp.ne.s32.totalorder %s728_s16, %s465_s4  ;;  %s470_s27 = scalar_lea.hbm %s822_s1, 256 }
  0x36   : > { %p471_p3 = scmp.lt.u32.totalorder %s728_s16, %s822_s1  ;;  %p472_p6 = scmp.lt.u32.totalorder %s470_s27, %s465_s4 }
  0x37   : > { %p468_p11 = pnand %p466_p9, %p437_p5  ;;  %p474_p10 = scmp.lt.u32.totalorder %s465_s4, %s728_s16 }
  0x38   : > { %p473_p4 = por %p472_p6, %p471_p3 }
  0x39   : > { %p469_p13 = pneg %p468_p11 }
  0x3a   : > { %p475_p12 = por %p474_p10, %p473_p4 }
  0x3c   : > { %p476_p1 = pnand %p475_p12, %p469_p13 }
  0x3e   : > { %479 = shalt.err (!%p476_p1)
}
  0x3f   : > { %s480_s25 = scalar_lea.vmem %s165_s19, 128  ;;  %s584_s26 = smov [#allocation6]  }
  0x40   : > { %p481_p2 = scmp.ne.s32.totalorder %s165_s19, %s480_s25  ;;  %s485_s3 = sshll.u32 %s584_s26, 4  ;;  %s486_s3 = int_to_ptr.vmem [resolvable:$false] %s485_s3 }
  0x41   : > { %s487_s8 = scalar_lea.vmem %s486_s3, 256  ;;  %p488_p8 = scmp.lt.s32.totalorder %s165_s19, %s486_s3 }
  0x42   : > { %p483_p9 = pnand %p481_p2, %p437_p5  ;;  %p489_p7 = scmp.lt.s32.totalorder %s487_s8, %s480_s25 }
  0x44   : > { %p484_p11 = pneg %p483_p9  ;;  %p490_p3 = por %p489_p7, %p488_p8 }
  0x46   : > { %p491_p6 = pnand %p490_p3, %p484_p11 }
  0x48   : > { %494 = shalt.err (!%p491_p6)
}
  0x49   : > { %380 = dma.hbm_to_vmem [thread:$0]  (!%p683_p0), %s728_s16, 128, %s165_s19, %s153_s30  }
  0x4a   : > { %p834_p13 = scmp.ne.s32.totalorder %s833_s7, 0 }
  0x4b   : > { %s755_s15 = sand.u32 (!%p834_p13), 1, %s565_s10   ;;  %p835_p5 = scmp.ne.s32.totalorder (!%p834_p13), %s827_s21, 0 }
  0x4c   : > { %173 = sbr.rel (%p834_p13) target bundleno = 112 (0x70), region = 28  ;;  %s361_s18 = sshll.u32 (!%p834_p13), %s755_s15, 3 }
  0x4d   : > { %s176_s4 = scalar_lea.sflag (!%p834_p13), [#allocation4], %s755_s15  ;;  %s179_s6 = scalar_lea.vmem (!%p834_p13), [#allocation3], %s361_s18 }
  0x53   : > { %548 = dma.done.wait (%p835_p5), %s176_s4, 128  }
  0x54   : > { %550 = vsyncadd (%p835_p5), %s176_s4, 4294967168  ;;  %s185_s5 = scalar_lea.sflag [#allocation7], %s755_s15  ;;  %s188_s16 = scalar_lea.vmem [#allocation6], %s361_s18 }
  0x55   : > { %552 = dma.done.wait (%p835_p5), %s185_s5, 128  }
  0x56   : > { %554 = vsyncadd (%p835_p5), %s185_s5, 4294967168  ;;  %v221_v0 = vld [vmem:[%s179_s6] sm:$0xff]  ;;  %v222_v1 = vld [vmem:[%s188_s16] sm:$0xff]  ;;  %s213_s7 = scalar_lea.vmem [#allocation8], %s361_s18  ;;  %s365_s30 = sshll.u32 %s573_s12, 7 }
  0x57   : > { %v223_v2 = vmul.f32 0.75, %v221_v0  ;;  %s249_s19 = sshll.u32 %s213_s7, 4  ;;  %s774_s21 = scalar_lea.hbm %s823_s2, %s365_s30  ;;  %s769_s19 = int_to_ptr.vmem [resolvable:$true] %s249_s19 }
  0x58   : > { %s236_s28 = scalar_lea.sflag [#allocation5], %s755_s15  ;;  %s495_s29 = scalar_lea.vmem %s769_s19, 128 }
  0x59   : > { %v224_v3 = vsub.f32 %v223_v2, %v222_v1  ;;  %p496_p8 = scmp.ne.s32.totalorder %s769_s19, %s495_s29  ;;  %p836_p0 = scmp.ne.s32.totalorder %s828_s22, 0 }
  0x5a   : > { %s585_s12 = smov [#allocation8]  }
  0x5b   : > { %v225_v4 = vmul.f32 %v224_v3, %v224_v3  ;;  %p497_p7 = pnand %p496_p8, %p836_p0  ;;  %s499_s25 = sshll.u32 %s585_s12, 4  ;;  %s500_s25 = int_to_ptr.vmem [resolvable:$false] %s499_s25 }
  0x5c   : > { %s501_s26 = scalar_lea.vmem %s500_s25, 256  ;;  %p502_p10 = scmp.lt.s32.totalorder %s769_s19, %s500_s25 }
  0x5d   : > { %234 = vst [vmem:[%s213_s7] sm:$0xff] %v225_v4  ;;  %p498_p4 = pneg %p497_p7  ;;  %p503_p12 = scmp.lt.s32.totalorder %s501_s26, %s495_s29 }
  0x5f   : > { %p504_p1 = por %p503_p12, %p502_p10 }
  0x61   : > { %p505_p2 = pnand %p504_p1, %p498_p4 }
  0x63   : > { %508 = shalt.err (!%p505_p2)
}
  0x64   : > { %s509_s3 = scalar_lea.hbm %s774_s21, 128  ;;  %s513_s18 = scalar_lea.hbm %s823_s2, 256 }
  0x65   : > { %p510_p9 = scmp.ne.s32.totalorder %s774_s21, %s509_s3  ;;  %p514_p6 = scmp.lt.u32.totalorder %s774_s21, %s823_s2 }
  0x66   : > { %p515_p13 = scmp.lt.u32.totalorder %s513_s18, %s509_s3  ;;  %p517_p8 = scmp.lt.u32.totalorder %s509_s3, %s774_s21 }
  0x67   : > { %p511_p11 = pnand %p510_p9, %p836_p0 }
  0x68   : > { %p516_p5 = por %p515_p13, %p514_p6 }
  0x69   : > { %p512_p3 = pneg %p511_p11 }
  0x6a   : > { %p518_p7 = por %p517_p8, %p516_p5 }
  0x6c   : > { %p519_p4 = pnand %p518_p7, %p512_p3 }
  0x6e   : > { %522 = shalt.err (!%p519_p4)
}
  0x6f   : > { %372 = dma.vmem_to_hbm [thread:$0]  (%p836_p0), %s769_s19, 128, %s774_s21, %s236_s28  }
  0x70 PF: > { %s261_s5 = sand.u32 1, %s561_s9   ;;  %p837_p10 = scmp.ne.s32.totalorder %s829_s24, 0 }
  0x71   : > { %p838_p12 = scmp.ge.s32.totalorder %s581_s14, 2  ;;  %s262_s16 = scalar_lea.sflag [#allocation5], %s261_s5 }
  0x73   : > { %p382_p1 = pnand %p838_p12, %p837_p10 }
  0x75   : > { %556 = dma.done.wait (!%p382_p1), %s262_s16, 128  }
  0x76   : > { %558 = vsyncadd (!%p382_p1), %s262_s16, 4294967168  ;;  %s21_s14 = sadd.s32 1, %s581_s14   ;;  %s839_s9 = smov %s565_s10 }
  0x77   : > { %p18_p2 = scmp.ge.s32.totalorder %s21_s14, 4   ;;  %s840_s10 = smov %s569_s11 }
  0x78   : > { %s841_s11 = smov %s657_s23  ;;  %s842_s12 = smov %s577_s13 }
  0x79   : > { %s843_s13 = smov %s845_s17  ;;  %20 = sbr.rel (!%p18_p2) target bundleno = 8 (0x8), region = 94 }
  0x80   :  { %267 = vsyncpa [#allocation4], 1 }
  0x81   :  { %269 = vsyncpa [#allocation4 + $0x1], 1 }
  0x82   :  { %270 = vsyncpa [#allocation7], 1 }
  0x83   :  { %272 = vsyncpa [#allocation7 + $0x1], 1 }
  0x84   :  { %273 = vsyncpa [#allocation5], 1 }
  0x85   :  { %275 = vsyncpa [#allocation5 + $0x1], 1 }

</bundles_post_ra>
